<compile_context>
chip_gen: v7x
topology: tpu7x:2x2x1
jax: 0.10.0
libtpu: 0.0.40
codegen_flags: <defaults>
</compile_context>

<pallas_src>
import math

import jax
import jax.numpy as jnp
from jax import lax
from jax.experimental import pallas as pl
from jax.experimental.pallas import tpu as pltpu


# ---------------------------------------------------------------------------
# Hardware introspection (defensive: falls back to v7x-conservative defaults).
# ---------------------------------------------------------------------------
def _tpu_generation():
    kind = ""
    try:
        kind = jax.devices()[0].device_kind.lower()
    except Exception:
        pass
    # Physical per-TensorCore VMEM.
    vmem_cap = 64 << 20                       # v7x (most restrictive generation)
    try:
        vmem_cap = int(pltpu.get_tpu_info().vmem_capacity_bytes)
    except Exception:
        if "v5" in kind or "v6" in kind:
            vmem_cap = 128 << 20
    # Default scoped-VMEM limit beyond which vmem_limit_bytes must be raised.
    default_scoped = (16 << 20) if "v5" in kind else (32 << 20)
    # one-hot-matmul vs row-gather crossover on frame_num:
    #   v5e MXU is ~4x slower -> much earlier crossover; v7x f32 matmul runs
    #   well below its bf16 peak -> lower than v6e.
    if "v5" in kind:
        crossover = 384
    elif "7" in kind:
        crossover = 1024
    else:
        crossover = 1536
    return vmem_cap, default_scoped, crossover


def _single_buffer_supported():
    """Probe whether BlockSpec(pipeline_mode=pl.Buffered(1)) is constructible."""
    try:
        pl.BlockSpec((8, 128), lambda i: (0, 0), pipeline_mode=pl.Buffered(1))
        return True
    except Exception:
        return False


_SINGLE_BUF = _single_buffer_supported()
_CODES_BUFS = 1 if _SINGLE_BUF else 2


# ---------------------------------------------------------------------------
# Kernels
# ---------------------------------------------------------------------------
def _make_onehot_kernel(q_axis, idx_resident):
    """Gather a (TQ, TD) tile via one_hot(idx) @ codes on the MXU.

    idx_ref:   int32 VMEM, (num_q_blocks, TQ, 1) resident OR (1, TQ, 1) per step
    codes_ref: f32  VMEM, (frame_num, TD) codebook slice, resident across q
    out_ref:   f32  VMEM, (TQ, TD)
    """
    def kernel(idx_ref, codes_ref, out_ref):
        if idx_resident:
            idx = idx_ref[pl.program_id(q_axis)]            # (TQ, 1)
        else:
            idx = idx_ref[0]                                 # (TQ, 1)
        tq = idx.shape[0]
        frame_num = codes_ref.shape[0]
        frame_ids = lax.broadcasted_iota(jnp.int32, (tq, frame_num), 1)
        one_hot = (frame_ids == idx).astype(codes_ref.dtype)          # (TQ, F)
        out_ref[...] = jnp.dot(
            one_hot, codes_ref[...], preferred_element_type=jnp.float32
        ).astype(out_ref.dtype)

    return kernel


def _make_row_gather_kernel(q_axis, tq):
    """Gather by copying rows out of the VMEM-resident codebook slice.

    idx_smem:  int32 SMEM, full padded index array (scalar-prefetched)
    codes_ref: f32  VMEM, (frame_num, TD) codebook slice, resident across q
    out_ref:   f32  VMEM, (TQ, TD)
    """
    def kernel(idx_smem, codes_ref, out_ref):
        base = pl.program_id(q_axis) * tq

        def body(q, carry):
            row = idx_smem[base + q]                          # scalar SMEM read
            out_ref[pl.ds(q, 1), :] = codes_ref[pl.ds(row, 1), :]
            return carry

        # unroll=8 lets the LLO scheduler overlap the per-row loads/stores.
        lax.fori_loop(0, tq, body, 0, unroll=8)

    return kernel


# ---------------------------------------------------------------------------
# Wrapper
# ---------------------------------------------------------------------------
def time_codes_lookup(t_codes, t_idx, *, force_path=None):
    """Pallas equivalent of TimeCodes.forward: returns t_codes[t_idx].

    Args:
      t_codes: float32[frame_num, t_dim] embedding table.
      t_idx:   int[N] frame indices.
      force_path: None (auto), "matmul", or "gather" (for testing).
    Returns:
      float32[N, t_dim] gathered rows.
    """
    assert t_idx.ndim == 1
    frame_num, t_dim = t_codes.shape
    n = int(t_idx.shape[0])
    assert n >= 1
    itemsize = jnp.dtype(t_codes.dtype).itemsize

    vmem_cap, default_scoped, crossover = _tpu_generation()
    usable_vmem = vmem_cap - (8 << 20)        # headroom below physical VMEM

    if force_path == "matmul":
        use_matmul = True
    elif force_path == "gather":
        use_matmul = False
    else:
        use_matmul = frame_num <= crossover

    # Clamp indices so a bad index can never address outside the table.
    # (PyTorch would raise on OOB; we clamp — identical for valid inputs.)
    idx = jnp.clip(t_idx.astype(jnp.int32), 0, frame_num - 1)

    n8 = max(8, ((n + 7) // 8) * 8)
    idx_resident = use_matmul and (n8 * 4 <= (4 << 20))

    # ---- choose (TQ, TD): biggest HBM-writeback tile that fits VMEM ----
    if t_dim % 128 == 0 and t_dim > 128:
        td_cands = [d for d in range(t_dim, 127, -128) if t_dim % d == 0]
    else:
        # t_dim < 128 (or not 128-aligned) -> single full-width slice; lane
        # width < 128 implies masked vst on writeback.
        # TODO(synk): pack multiple query tiles along lanes for t_dim < 128.
        td_cands = [t_dim]
    tq_cap = min(1024, n8)
    tq_cands = [t for t in (1024, 512, 256, 128, 64, 32, 16, 8) if t <= tq_cap] or [8]

    def est_bytes(tq, td):
        b = _CODES_BUFS * frame_num * td * itemsize       # resident codebook slice
        b += 2 * tq * td * itemsize                       # double-buffered output
        if use_matmul:
            b += 2 * tq * frame_num * 4                   # one-hot + iota/cmp temps
            b += min(n8 * 4, 4 << 20) if idx_resident else 2 * tq * 4
        b += 2 << 20                                      # internal scratch headroom
        return b

    tq_eff, td = tq_cands[-1], td_cands[-1]
    found = False
    for tq_c in tq_cands:                                 # biggest writeback tile first
        for td_c in td_cands:                             # then widest lane slice
            if est_bytes(tq_c, td_c) <= usable_vmem:
                tq_eff, td = tq_c, td_c
                found = True
                break
        if found:
            break
    est_vmem = est_bytes(tq_eff, td)

    if est_vmem > usable_vmem:
        # TODO(synk): codebook slice does not fit VMEM even at the minimum tile;
        # the proper kernel is a manually double-buffered HBM->VMEM DMA row
        # gather (memory_space=pl.ANY + make_async_copy). Use XLA's gather.
        return jnp.take(t_codes, idx, axis=0)

    num_q_blocks = pl.cdiv(n, tq_eff)
    n_pad = num_q_blocks * tq_eff
    if n_pad != n:
        idx = jnp.pad(idx, (0, n_pad - n))   # padded queries read row 0; never written back
    num_d_blocks = t_dim // td

    # Grid / megacore semantics.
    if num_d_blocks == 1:
        grid = (num_q_blocks,)
        semantics = ("parallel",)
        q_axis = 0
    else:
        grid = (num_d_blocks, num_q_blocks)
        semantics = ("parallel", "arbitrary")
        q_axis = 1

    compiler_kwargs = dict(dimension_semantics=semantics)
    if est_vmem > default_scoped:
        compiler_kwargs["vmem_limit_bytes"] = int(
            min(est_vmem * 1.25, vmem_cap - (8 << 20)))

    out_shape = jax.ShapeDtypeStruct((n, t_dim), t_codes.dtype)

    def _build_and_call(single_buffer):
        def resident_spec(shape, imap):
            if single_buffer:
                return pl.BlockSpec(shape, imap, pipeline_mode=pl.Buffered(1))
            return pl.BlockSpec(shape, imap)

        if use_matmul:
            kernel = _make_onehot_kernel(q_axis, idx_resident)
            if q_axis == 0:
                codes_map = lambda i: (0, 0)
                out_map = lambda i: (i, 0)
                idx_map = (lambda i: (0, 0, 0)) if idx_resident else (lambda i: (i, 0, 0))
            else:
                codes_map = lambda j, i: (0, j)
                out_map = lambda j, i: (i, j)
                idx_map = (lambda j, i: (0, 0, 0)) if idx_resident else (lambda j, i: (i, 0, 0))
            idx_tiles = idx.reshape(num_q_blocks, tq_eff, 1)
            if idx_resident:
                idx_spec = resident_spec((num_q_blocks, tq_eff, 1), idx_map)
            else:
                idx_spec = pl.BlockSpec((1, tq_eff, 1), idx_map)
            return pl.pallas_call(
                kernel,
                grid=grid,
                in_specs=[idx_spec, resident_spec((frame_num, td), codes_map)],
                out_specs=pl.BlockSpec((tq_eff, td), out_map),
                out_shape=out_shape,
                compiler_params=pltpu.CompilerParams(**compiler_kwargs),
            )(idx_tiles, t_codes)

        # Row-gather path: indices live in SMEM via scalar prefetch.
        # TODO(synk): scalar-prefetched indices cap N by SMEM size; chunk the
        # query axis at the wrapper level for very large N.
        kernel = _make_row_gather_kernel(q_axis, tq_eff)
        if q_axis == 0:
            codes_map = lambda i, idx_ref: (0, 0)
            out_map = lambda i, idx_ref: (i, 0)
        else:
            codes_map = lambda j, i, idx_ref: (0, j)
            out_map = lambda j, i, idx_ref: (i, j)
        gs = pltpu.PrefetchScalarGridSpec(
            num_scalar_prefetch=1,
            grid=grid,
            in_specs=[resident_spec((frame_num, td), codes_map)],
            out_specs=pl.BlockSpec((tq_eff, td), out_map),
        )
        return pl.pallas_call(
            kernel,
            grid_spec=gs,
            out_shape=out_shape,
            compiler_params=pltpu.CompilerParams(**compiler_kwargs),
        )(idx, t_codes)

    if _SINGLE_BUF:
        try:
            return _build_and_call(True)
        except Exception:
            pass  # fall back to default (double) buffering of the codebook
    return _build_and_call(False)


def init_t_codes(key, frame_num, t_dim):
    """Deterministic kaiming_uniform_(a=sqrt(5), mode='fan_in') init.

    For a 2D tensor, fan_in = t_dim; gain = sqrt(2/(1+a^2)) = sqrt(1/3);
    bound = sqrt(3) * gain / sqrt(fan_in) = 1/sqrt(fan_in).
    """
    bound = 1.0 / math.sqrt(t_dim)
    return jax.random.uniform(
        key, (frame_num, t_dim), dtype=jnp.float32, minval=-bound, maxval=bound
    )


if __name__ == "__main__":
    key = jax.random.PRNGKey(0)
    k_codes, k_idx, k_codes2, k_idx2 = jax.random.split(key, 4)

    # --- Path A: small codebook -> one-hot MXU gather (auto-selected). ---
    # N not a multiple of 8 exercises the ragged final output block (no slice).
    frame_num, t_dim, n = 16, 128, 13
    t_codes = init_t_codes(k_codes, frame_num, t_dim)
    t_idx = jax.random.randint(k_idx, (n,), 0, frame_num, dtype=jnp.int32)
    out = jax.block_until_ready(time_codes_lookup(t_codes, t_idx))
    ref = t_codes[t_idx]
    assert out.shape == (n, t_dim) and out.dtype == jnp.float32
    assert bool(jnp.allclose(out, ref, atol=1e-6)), "one-hot path mismatch"

    # --- Path B: row-gather path (forced here; auto for large frame_num). ---
    frame_num2, t_dim2, n2 = 64, 256, 29
    t_codes2 = init_t_codes(k_codes2, frame_num2, t_dim2)
    t_idx2 = jax.random.randint(k_idx2, (n2,), 0, frame_num2, dtype=jnp.int32)
    out2 = jax.block_until_ready(
        time_codes_lookup(t_codes2, t_idx2, force_path="gather"))
    ref2 = t_codes2[t_idx2]
    assert out2.shape == (n2, t_dim2) and out2.dtype == jnp.float32
    assert bool(jnp.allclose(out2, ref2, atol=1e-6)), "row-gather path mismatch"

    print("KERNEL_OK")
</pallas_src>

<mosaic_0001>
module attributes {stable_mosaic.version = 11 : i64} {
  func.func @kernel(%arg0: i32, %arg1: memref<1x16x1xi32, #tpu.memory_space<vmem>>, %arg2: memref<16x128xf32, #tpu.memory_space<vmem>>, %arg3: memref<16x128xf32, #tpu.memory_space<vmem>>) attributes {dimension_semantics = [#tpu.dimension_semantics<parallel>], iteration_bounds = array<i64: 1>, scalar_prefetch = 0 : i64, scratch_operands = 0 : i64, tpu.core_type = #tpu.core_type<tc>, window_params = [{pipeline_mode = #tpu.pipeline_mode<synchronous>, transform_indices = @transform_0, window_bounds = array<i64: 1, 16, 1>}, {pipeline_mode = #tpu.pipeline_mode<synchronous>, transform_indices = @transform_1, window_bounds = array<i64: 16, 128>}, {transform_indices = @transform_2, window_bounds = array<i64: 16, 128>}]} {
    %0 = arith.index_cast %arg0 : i32 to index
    %c0 = arith.constant 0 : index
    %c0_0 = arith.constant 0 : index
    %1 = vector.load %arg1[%0, %c0, %c0_0] : memref<1x16x1xi32, #tpu.memory_space<vmem>>, vector<1x16x1xi32>
    %2 = vector.shape_cast %1 : vector<1x16x1xi32> to vector<16x1xi32>
    %3 = tpu.iota {dimensions = array<i32: 1>} : vector<16x16xi32>
    %4 = vector.broadcast %2 : vector<16x1xi32> to vector<16x16xi32>
    %5 = arith.cmpi eq, %3, %4 : vector<16x16xi32>
    %6 = arith.extui %5 : vector<16x16xi1> to vector<16x16xi32>
    %7 = arith.sitofp %6 : vector<16x16xi32> to vector<16x16xf32>
    %c0_1 = arith.constant 0 : index
    %c0_2 = arith.constant 0 : index
    %8 = vector.load %arg2[%c0_1, %c0_2] : memref<16x128xf32, #tpu.memory_space<vmem>>, vector<16x128xf32>
    %cst = arith.constant dense<0.000000e+00> : vector<16x128xf32>
    %9 = tpu.matmul %7, %8, %cst {dimension_numbers = #tpu.dot_dimension_numbers<[1], [0], [0], [1], [0, 0, 1, 1], [], []>} : vector<16x16xf32>, vector<16x128xf32>, vector<16x128xf32> -> vector<16x128xf32>
    %c0_3 = arith.constant 0 : index
    %c0_4 = arith.constant 0 : index
    %10 = vector.load %arg3[%c0_3, %c0_4] : memref<16x128xf32, #tpu.memory_space<vmem>>, vector<16x128xf32>
    tpu.vector_store %arg3[%c0_3, %c0_4], %9 {strides = array<i32>} : memref<16x128xf32, #tpu.memory_space<vmem>>, vector<16x128xf32>,
    return
  }
  func.func @transform_0(%arg0: i32) -> (i32, i32, i32) {
    %c0_i32 = arith.constant 0 : i32
    %c0_i32_0 = arith.constant 0 : i32
    %c0_i32_1 = arith.constant 0 : i32
    %c0_i32_2 = arith.constant 0 : i32
    return %c0_i32, %c0_i32_0, %c0_i32_1 : i32, i32, i32
  }
  func.func @transform_1(%arg0: i32) -> (i32, i32) {
    %c0_i32 = arith.constant 0 : i32
    %c0_i32_0 = arith.constant 0 : i32
    %c0_i32_1 = arith.constant 0 : i32
    return %c0_i32, %c0_i32_0 : i32, i32
  }
  func.func @transform_2(%arg0: i32) -> (i32, i32) {
    %c0_i32 = arith.constant 0 : i32
    %c0_i32_0 = arith.constant 0 : i32
    return %arg0, %c0_i32 : i32, i32
  }
}

module attributes {stable_mosaic.version = 11 : i64} {
  func.func @kernel(%arg0: i32, %arg1: memref<1x16x1xi32, #tpu.memory_space<vmem>>, %arg2: memref<16x128xf32, #tpu.memory_space<vmem>>, %arg3: memref<16x128xf32, #tpu.memory_space<vmem>>) attributes {dimension_semantics = [#tpu.dimension_semantics<parallel>], iteration_bounds = array<i64: 1>, scalar_prefetch = 0 : i64, scratch_operands = 0 : i64, tpu.core_type = #tpu.core_type<tc>, window_params = [{pipeline_mode = #tpu.pipeline_mode<synchronous>, transform_indices = @transform_0, window_bounds = array<i64: 1, 16, 1>}, {pipeline_mode = #tpu.pipeline_mode<synchronous>, transform_indices = @transform_1, window_bounds = array<i64: 16, 128>}, {transform_indices = @transform_2, window_bounds = array<i64: 16, 128>}]} {
    %0 = arith.index_cast %arg0 : i32 to index
    %c0 = arith.constant 0 : index
    %c0_0 = arith.constant 0 : index
    %1 = vector.load %arg1[%0, %c0, %c0_0] : memref<1x16x1xi32, #tpu.memory_space<vmem>>, vector<1x16x1xi32>
    %2 = vector.shape_cast %1 : vector<1x16x1xi32> to vector<16x1xi32>
    %3 = tpu.iota {dimensions = array<i32: 1>} : vector<16x16xi32>
    %4 = vector.broadcast %2 : vector<16x1xi32> to vector<16x16xi32>
    %5 = arith.cmpi eq, %3, %4 : vector<16x16xi32>
    %6 = arith.extui %5 : vector<16x16xi1> to vector<16x16xi32>
    %7 = arith.sitofp %6 : vector<16x16xi32> to vector<16x16xf32>
    %c0_1 = arith.constant 0 : index
    %c0_2 = arith.constant 0 : index
    %8 = vector.load %arg2[%c0_1, %c0_2] : memref<16x128xf32, #tpu.memory_space<vmem>>, vector<16x128xf32>
    %cst = arith.constant dense<0.000000e+00> : vector<16x128xf32>
    %9 = tpu.matmul %7, %8, %cst {dimension_numbers = #tpu.dot_dimension_numbers<[1], [0], [0], [1], [0, 0, 1, 1], [], []>} : vector<16x16xf32>, vector<16x128xf32>, vector<16x128xf32> -> vector<16x128xf32>
    %c0_3 = arith.constant 0 : index
    %c0_4 = arith.constant 0 : index
    %10 = vector.load %arg3[%c0_3, %c0_4] : memref<16x128xf32, #tpu.memory_space<vmem>>, vector<16x128xf32>
    tpu.vector_store %arg3[%c0_3, %c0_4], %9 {strides = array<i32>} : memref<16x128xf32, #tpu.memory_space<vmem>>, vector<16x128xf32>,
    return
  }
  func.func @transform_0(%arg0: i32) -> (i32, i32, i32) {
    %c0_i32 = arith.constant 0 : i32
    %c0_i32_0 = arith.constant 0 : i32
    %c0_i32_1 = arith.constant 0 : i32
    %c0_i32_2 = arith.constant 0 : i32
    return %c0_i32, %c0_i32_0, %c0_i32_1 : i32, i32, i32
  }
  func.func @transform_1(%arg0: i32) -> (i32, i32) {
    %c0_i32 = arith.constant 0 : i32
    %c0_i32_0 = arith.constant 0 : i32
    %c0_i32_1 = arith.constant 0 : i32
    return %c0_i32, %c0_i32_0 : i32, i32
  }
  func.func @transform_2(%arg0: i32) -> (i32, i32) {
    %c0_i32 = arith.constant 0 : i32
    %c0_i32_0 = arith.constant 0 : i32
    return %arg0, %c0_i32 : i32, i32
  }
}

</mosaic_0001>

<bundles_post_ra>
// kernel: tpu_custom_call.1
= control target key start
LH: loop header
LB: loop body
LE: loop exit
PB: predicated region body
PF: predicated region fallthrough
CT: control target
= control target key end

     0   :  { %s225_s0 = inlined_call_operand.vmem [shape: s32[1,16,1], index: 0, kind: input, shape index: {}]   ;;  %s226_s1 = inlined_call_operand.vmem [shape: f32[16,128], index: 1, kind: input, shape index: {}]   ;;  %s227_s2 = inlined_call_operand.hbm [shape: f32[13,128], index: 2, kind: output, shape index: {}]  }
   0x1   :  { %v14_v0 = vld [vmem:[%s225_s0] sm:$0xff] }
   0x2   :  { %7 = vsyncpa [#allocation3], 0  ;;  %v181_v1 = vmov 0   ;;  %v30_v2 = vld [vmem:[%s226_s1] sm:$0xff]  ;;  %v31_v3 = vld [vmem:[%s226_s1 + $0x8] sm:$0xff]  ;;  %v16_v6 = vlaneseq  ;;  %vm32_vm0 = vcmask 130048  }
   0x3   :  { %156 = vset.pattern.permute.xlu0 %v181_v1  ;;  %v147_v4 = vpack.c.bf16 %v31_v3, %v30_v2  ;;  %v15_v5 = vld [vmem:[%s225_s0 + $0x8] sm:$0xff]  ;;  %v182_v9 = vmov 0.0   ;;  %s183_s1 = smov [#allocation2]  }
   0x4   :  { %19 = vperm.xlu0 %156, %v14_v0   ;;  %v17_v7 = vand.u32 127, %v16_v6  ;;  %s121_s17 = sshll.u32 %s183_s1, 4  ;;  %s122_s17 = int_to_ptr.vmem [resolvable:$true] %s121_s17 }
   0x5   :  { %148 = vmatprep.subr.bf16.mxu0 %v147_v4  ;;  %s157_s0 = scalar_lea.vmem %s122_s17, 256  ;;  %p162_p1 = scmp.lt.s32.totalorder %s122_s17, %s122_s17 }
   0x6   :  { %150 = vmatpush3.bf16.msra.mxu0 %v147_v4  ;;  %p158_p0 = scmp.ne.s32.totalorder %s122_s17, %s157_s0  ;;  %p163_p2 = scmp.lt.s32.totalorder %s157_s0, %s157_s0 }
   0x8   :  { %22 = vperm.xlu0 %156, %v15_v5   ;;  %p164_p3 = por %p163_p2, %p162_p1 }
   0xa   :  { %p165_p4 = pnand %p164_p3, %p158_p0 }
  0x83   :  { %v20_v8 = vpop.permute.xlu0 %19 }
  0x84   :  { %vm24_vm1 = vcmp.eq.s32.totalorder %v17_v7, %v20_v8 }
  0x85   :  { %v132_v10 = vsel %vm24_vm1, 1.0, %v182_v9 }
  0x86   :  { %144 = vmatprep.mubr.msk.f32.mxu0 %vm32_vm0, %v132_v10 }
  0x87   :  { %v23_v11 = vpop.permute.xlu0 %22 }
  0x88   :  { %vm25_vm2 = vcmp.eq.s32.totalorder %v17_v7, %v23_v11 }
  0x89   :  { %v133_v12 = vsel %vm25_vm2, 1.0, %v182_v9 }
  0x8a   :  { %145 = vmatmul.mubr.msk.f32.vlgmr.msra.gmra.mrb[0].mxu0 %vm32_vm0, %v133_v12 }
 0x15d   :  { %v146_v13 = vpop.f32.mrb[0].mxu0 }
 0x15e   :  { %115 = vst [vmem:[#allocation2 + $0x8] sm:$0xff] %v146_v13  ;;  %v105_v14 = vpop.f32.mrb[1].mxu0 }
 0x15f   :  { %114 = vst [vmem:[#allocation2] sm:$0xff] %v105_v14 }
 0x160   :  { %168 = shalt.err (!%p165_p4)
}
 0x161   :  { %s169_s20 = scalar_lea.hbm %s227_s2, 256 }
 0x162   :  { %p170_p5 = scmp.ne.s32.totalorder %s227_s2, %s169_s20  ;;  %p173_p6 = scmp.lt.u32.totalorder %s169_s20, %s227_s2 }
 0x164   :  { %p175_p7 = pnand %p173_p6, %p170_p5 }
 0x166   :  { %178 = shalt.err (!%p175_p7)
}
 0x167   :  { %s184_s25 = smov 128   ;;  %s185_s26 = smov 8  }
 0x168   :  { %127 = dma.vmem_to_hbm [thread:$0]  %s122_s17, 256, %s227_s2, [#allocation3], %s184_s25, %s184_s25, %s185_s26  }
 0x169   :  { %179 = dma.done.wait [#allocation3], 256  }
 0x16a   :  { %180 = vsyncadd [#allocation3], 4294967040 }
 0x16b   :  { %131 = vsyncpa [#allocation3], 1 }

// kernel: tpu_custom_call.1
= control target key start
LH: loop header
LB: loop body
LE: loop exit
PB: predicated region body
PF: predicated region fallthrough
CT: control target
= control target key end

     0   :  { %s225_s0 = inlined_call_operand.vmem [shape: s32[1,16,1], index: 0, kind: input, shape index: {}]   ;;  %s226_s1 = inlined_call_operand.vmem [shape: f32[16,128], index: 1, kind: input, shape index: {}]   ;;  %s227_s2 = inlined_call_operand.hbm [shape: f32[13,128], index: 2, kind: output, shape index: {}]  }
   0x1   :  { %v14_v0 = vld [vmem:[%s225_s0] sm:$0xff] }
   0x2   :  { %7 = vsyncpa [#allocation3], 0  ;;  %v181_v1 = vmov 0   ;;  %v30_v2 = vld [vmem:[%s226_s1] sm:$0xff]  ;;  %v31_v3 = vld [vmem:[%s226_s1 + $0x8] sm:$0xff]  ;;  %v16_v6 = vlaneseq  ;;  %vm32_vm0 = vcmask 130048  }
   0x3   :  { %156 = vset.pattern.permute.xlu0 %v181_v1  ;;  %v147_v4 = vpack.c.bf16 %v31_v3, %v30_v2  ;;  %v15_v5 = vld [vmem:[%s225_s0 + $0x8] sm:$0xff]  ;;  %v182_v9 = vmov 0.0   ;;  %s183_s1 = smov [#allocation2]  }
   0x4   :  { %19 = vperm.xlu0 %156, %v14_v0   ;;  %v17_v7 = vand.u32 127, %v16_v6  ;;  %s121_s17 = sshll.u32 %s183_s1, 4  ;;  %s122_s17 = int_to_ptr.vmem [resolvable:$true] %s121_s17 }
   0x5   :  { %148 = vmatprep.subr.bf16.mxu0 %v147_v4  ;;  %s157_s0 = scalar_lea.vmem %s122_s17, 256  ;;  %p162_p1 = scmp.lt.s32.totalorder %s122_s17, %s122_s17 }
   0x6   :  { %150 = vmatpush3.bf16.msra.mxu0 %v147_v4  ;;  %p158_p0 = scmp.ne.s32.totalorder %s122_s17, %s157_s0  ;;  %p163_p2 = scmp.lt.s32.totalorder %s157_s0, %s157_s0 }
   0x8   :  { %22 = vperm.xlu0 %156, %v15_v5   ;;  %p164_p3 = por %p163_p2, %p162_p1 }
   0xa   :  { %p165_p4 = pnand %p164_p3, %p158_p0 }
  0x83   :  { %v20_v8 = vpop.permute.xlu0 %19 }
  0x84   :  { %vm24_vm1 = vcmp.eq.s32.totalorder %v17_v7, %v20_v8 }
  0x85   :  { %v132_v10 = vsel %vm24_vm1, 1.0, %v182_v9 }
  0x86   :  { %144 = vmatprep.mubr.msk.f32.mxu0 %vm32_vm0, %v132_v10 }
  0x87   :  { %v23_v11 = vpop.permute.xlu0 %22 }
  0x88   :  { %vm25_vm2 = vcmp.eq.s32.totalorder %v17_v7, %v23_v11 }
  0x89   :  { %v133_v12 = vsel %vm25_vm2, 1.0, %v182_v9 }
  0x8a   :  { %145 = vmatmul.mubr.msk.f32.vlgmr.msra.gmra.mrb[0].mxu0 %vm32_vm0, %v133_v12 }
 0x15d   :  { %v146_v13 = vpop.f32.mrb[0].mxu0 }
 0x15e   :  { %115 = vst [vmem:[#allocation2 + $0x8] sm:$0xff] %v146_v13  ;;  %v105_v14 = vpop.f32.mrb[1].mxu0 }
 0x15f   :  { %114 = vst [vmem:[#allocation2] sm:$0xff] %v105_v14 }
 0x160   :  { %168 = shalt.err (!%p165_p4)
}
 0x161   :  { %s169_s20 = scalar_lea.hbm %s227_s2, 256 }
 0x162   :  { %p170_p5 = scmp.ne.s32.totalorder %s227_s2, %s169_s20  ;;  %p173_p6 = scmp.lt.u32.totalorder %s169_s20, %s227_s2 }
 0x164   :  { %p175_p7 = pnand %p173_p6, %p170_p5 }
 0x166   :  { %178 = shalt.err (!%p175_p7)
}
 0x167   :  { %s184_s25 = smov 128   ;;  %s185_s26 = smov 8  }
 0x168   :  { %127 = dma.vmem_to_hbm [thread:$0]  %s122_s17, 256, %s227_s2, [#allocation3], %s184_s25, %s184_s25, %s185_s26  }
 0x169   :  { %179 = dma.done.wait [#allocation3], 256  }
 0x16a   :  { %180 = vsyncadd [#allocation3], 4294967040 }
 0x16b   :  { %131 = vsyncpa [#allocation3], 1 }

</bundles_post_ra>
